<compile_context>
chip_gen: v5e
topology: v5e:2x2
jax: 0.10.0
libtpu: 0.0.40
codegen_flags: <defaults>
</compile_context>

<pallas_src>
import functools

import jax
import jax.numpy as jnp
from jax.experimental import pallas as pl
from jax.experimental.pallas import tpu as pltpu

_LANES = 128
_BLOCK_ROWS = 4096            # 4096 x 128 x 4B = 2 MiB per f32 chunk per grid step
_FAST_PATH_MAX_ROWS = 8192    # <= 4 MiB f32 slab stays fully VMEM-resident (safe on v5e/v6e/v7x)
_NSPLIT = 2                   # pass-1 reduction split for v7x megacore; no-op cost on 1-TC chips


def _fused_kernel(x_ref, o_ref):
    """Single-pass path: whole (rows, 128) slab resident in VMEM."""
    x = x_ref[...].astype(jnp.float32)
    m = jnp.max(x, keepdims=True)                     # (1, 1) global max
    p = jnp.exp(x - m)                                # -inf pad -> exp == 0
    s = jnp.sum(p, keepdims=True)                     # (1, 1)
    o_ref[...] = (p / s).astype(o_ref.dtype)          # exact divide


def _reduce_kernel(x_ref, m_ref, s_ref, *, chunks_per_split, total_rows, need_row_mask):
    """Pass 1: per-lane online (max, rescaled sum) partials, split over _NSPLIT."""
    c = pl.program_id(0)      # reduction split (parallel -> 2 TCs on v7x)
    i = pl.program_id(1)      # chunk within this split (sequential accumulation)

    @pl.when(i == 0)
    def _():
        m_ref[...] = jnp.full_like(m_ref, -jnp.inf)
        s_ref[...] = jnp.zeros_like(s_ref)

    x = x_ref[...].astype(jnp.float32)                # (_BLOCK_ROWS, 128)
    if need_row_mask:
        # Chunks can hang past the end of the slab: those rows hold unspecified
        # data, so force them to -inf (neutral for both max and sum).
        row0 = (c * chunks_per_split + i) * _BLOCK_ROWS
        rows = row0 + jax.lax.broadcasted_iota(jnp.int32, x.shape, 0)
        x = jnp.where(rows < total_rows, x, -jnp.inf)

    m_old = m_ref[...]                                # (8, 128) per-lane running max (sublane-replicated)
    chunk_max = jnp.max(x, axis=0, keepdims=True)     # (1, 128)
    m_new = jnp.maximum(m_old, chunk_max)             # (8, 128)
    # "Safe" max: lanes that have only ever seen -inf subtract 0 instead of
    # -inf, so exp() yields 0 rather than NaN (keeps padded/empty lanes inert;
    # an all--inf input still gives NaN, matching the reference).
    m_safe = jnp.where(m_new == -jnp.inf, 0.0, m_new)             # (8, 128)
    m_row = jnp.max(m_safe, axis=0, keepdims=True)                # (1, 128)
    p_sum = jnp.sum(jnp.exp(x - m_row), axis=0, keepdims=True)    # (1, 128)
    s_ref[...] = s_ref[...] * jnp.exp(m_old - m_safe) + p_sum
    m_ref[...] = m_new


def _normalize_kernel(x_ref, m_ref, s_ref, o_ref):
    """Pass 2: combine the tiny per-split/per-lane partials, then normalize."""
    m_parts = m_ref[...]                              # (_NSPLIT*8, 128) f32 (resident)
    s_parts = s_ref[...]
    m_g = jnp.max(m_parts, keepdims=True)             # (1, 1) global max
    # Each per-lane partial is replicated across its 8 sublanes -> scale by 1/8 (exact).
    s_g = jnp.sum(s_parts * jnp.exp(m_parts - m_g), keepdims=True) * 0.125
    x = x_ref[...].astype(jnp.float32)
    o_ref[...] = (jnp.exp(x - m_g) / s_g).astype(o_ref.dtype)     # exact divide


@jax.jit
def softmax_stable(x):
    """Pallas equivalent of SoftmaxStable.forward for a 1D tensor."""
    assert x.ndim == 1, "SoftmaxStable reference operates on a 1D tensor"
    n = x.shape[0]
    assert n > 0
    dtype = x.dtype

    rows = pl.cdiv(n, _LANES)
    padded = rows * _LANES
    if padded != n:
        # Pad only to the next lane multiple; -inf is neutral for max and sum.
        x = jnp.pad(x, (0, padded - n), constant_values=-jnp.inf)
    x2 = x.reshape(rows, _LANES)                      # free for contiguous data

    if rows <= _FAST_PATH_MAX_ROWS:
        # --- Fused single-pass path: whole slab resident in VMEM -------------
        out2 = pl.pallas_call(
            _fused_kernel,
            out_shape=jax.ShapeDtypeStruct((rows, _LANES), dtype),
            compiler_params=pltpu.CompilerParams(
                vmem_limit_bytes=32 * 1024 * 1024),
        )(x2)
    else:
        # --- Pass 1: tiled online reduction, split across _NSPLIT ------------
        num_chunks = pl.cdiv(rows, _BLOCK_ROWS)
        chunks_per_split = pl.cdiv(num_chunks, _NSPLIT)
        need_row_mask = _NSPLIT * chunks_per_split * _BLOCK_ROWS > rows

        chunk1_spec = pl.BlockSpec(
            (_BLOCK_ROWS, _LANES), lambda c, i: (c * chunks_per_split + i, 0))
        part_spec = pl.BlockSpec((8, _LANES), lambda c, i: (c, 0))

        m_parts, s_parts = pl.pallas_call(
            functools.partial(_reduce_kernel,
                              chunks_per_split=chunks_per_split,
                              total_rows=rows,
                              need_row_mask=need_row_mask),
            out_shape=(jax.ShapeDtypeStruct((_NSPLIT * 8, _LANES), jnp.float32),
                       jax.ShapeDtypeStruct((_NSPLIT * 8, _LANES), jnp.float32)),
            grid=(_NSPLIT, chunks_per_split),
            in_specs=[chunk1_spec],
            out_specs=(part_spec, part_spec),
            compiler_params=pltpu.CompilerParams(
                dimension_semantics=("parallel", "arbitrary")),
        )(x2)

        # --- Pass 2: normalize (partials combined per step, chunks parallel) -
        chunk2_spec = pl.BlockSpec((_BLOCK_ROWS, _LANES), lambda i: (i, 0))
        parts_spec = pl.BlockSpec((_NSPLIT * 8, _LANES), lambda i: (0, 0))

        out2 = pl.pallas_call(
            _normalize_kernel,
            out_shape=jax.ShapeDtypeStruct((rows, _LANES), dtype),
            grid=(num_chunks,),
            in_specs=[chunk2_spec, parts_spec, parts_spec],
            out_specs=chunk2_spec,
            compiler_params=pltpu.CompilerParams(
                dimension_semantics=("parallel",)),
        )(x2, m_parts, s_parts)

    out = out2.reshape(-1)
    if padded != n:
        out = out[:n]                                 # slice only when N isn't lane-aligned
    return out


def _ref_softmax(x):
    e = jnp.exp(x - jnp.max(x))
    return e / jnp.sum(e)


if __name__ == "__main__":
    key = jax.random.PRNGKey(0)
    k_small, k_big = jax.random.split(key)

    # Small 1D input (seq = 8), matching the module docstring ("Tensor 1D").
    x = jax.random.normal(k_small, (8,), dtype=jnp.float32)
    out = jax.block_until_ready(softmax_stable(x))
    ref = _ref_softmax(x)
    assert out.shape == x.shape
    assert jnp.allclose(out, ref, rtol=1e-4, atol=1e-6), (out, ref)
    assert jnp.isclose(jnp.sum(out), 1.0, atol=1e-4)

    # Larger, lane-unaligned input exercising the tiled two-pass fallback
    # (ragged tail masking, partial chunks, split reduction, output slice).
    xb = jax.random.normal(k_big, (1_300_001,), dtype=jnp.float32)
    outb = jax.block_until_ready(softmax_stable(xb))
    refb = _ref_softmax(xb)
    assert outb.shape == xb.shape
    assert jnp.allclose(outb, refb, rtol=1e-3, atol=1e-9)
    assert jnp.isclose(jnp.sum(outb), 1.0, atol=1e-3)

    print("KERNEL_OK")
</pallas_src>

<mosaic_0001>
module attributes {stable_mosaic.version = 11 : i64} {
  func.func @_fused_kernel(%arg0: memref<1x128xf32, #tpu.memory_space<vmem>>, %arg1: memref<1x128xf32, #tpu.memory_space<vmem>>) attributes {dimension_semantics = [], scalar_prefetch = 0 : i64, scratch_operands = 0 : i64, tpu.core_type = #tpu.core_type<tc>} {
    %c0 = arith.constant 0 : index
    %c0_0 = arith.constant 0 : index
    %0 = vector.load %arg0[%c0, %c0_0] : memref<1x128xf32, #tpu.memory_space<vmem>>, vector<1x128xf32>
    %1 = vector.shape_cast %0 : vector<1x128xf32> to vector<1x1x128xf32>
    %cst = arith.constant dense<0xFF800000> : vector<1xf32>
    %2 = vector.multi_reduction <maximumf>, %1, %cst [1, 2] : vector<1x1x128xf32> to vector<1xf32>
    %3 = vector.shape_cast %2 : vector<1xf32> to vector<1x1x1xf32>
    %4 = vector.extract %3[0, 0, 0] : f32 from vector<1x1x1xf32>
    %5 = vector.broadcast %4 : f32 to vector<1x1xf32>
    %6 = vector.broadcast %5 : vector<1x1xf32> to vector<1x128xf32>
    %7 = arith.subf %0, %6 : vector<1x128xf32>
    %8 = math.exp %7 : vector<1x128xf32>
    %9 = vector.shape_cast %8 : vector<1x128xf32> to vector<1x1x128xf32>
    %cst_1 = arith.constant dense<0.000000e+00> : vector<1xf32>
    %10 = vector.multi_reduction <add>, %9, %cst_1 [1, 2] : vector<1x1x128xf32> to vector<1xf32>
    %11 = vector.shape_cast %10 : vector<1xf32> to vector<1x1x1xf32>
    %12 = vector.extract %11[0, 0, 0] : f32 from vector<1x1x1xf32>
    %13 = vector.broadcast %12 : f32 to vector<1x1xf32>
    %14 = vector.broadcast %13 : vector<1x1xf32> to vector<1x128xf32>
    %15 = arith.divf %8, %14 : vector<1x128xf32>
    %c0_2 = arith.constant 0 : index
    %c0_3 = arith.constant 0 : index
    %16 = vector.load %arg1[%c0_2, %c0_3] : memref<1x128xf32, #tpu.memory_space<vmem>>, vector<1x128xf32>
    tpu.vector_store %arg1[%c0_2, %c0_3], %15 {strides = array<i32>} : memref<1x128xf32, #tpu.memory_space<vmem>>, vector<1x128xf32>,
    return
  }
}

</mosaic_0001>

<bundles_post_ra>
// kernel: softmax_stable.1
= control target key start
LH: loop header
LB: loop body
LE: loop exit
PB: predicated region body
PF: predicated region fallthrough
CT: control target
= control target key end

     0   :  { %vm9_vm0 = vcmask 1040384   ;;  %s81_s0 = inlined_call_operand.vmem [shape: f32[1,128], index: 0, kind: input, shape index: {}]   ;;  %s82_s1 = inlined_call_operand.vmem [shape: f32[1,128], index: 1, kind: output, shape index: {}]  }
   0x1   :  { %v8_v0 = vld [vmem:[%s81_s0] sm:$0x1] }
   0x2   :  { %v10_v1 = vsel %vm9_vm0, %v8_v0, -inf }
   0x3   :  { %11 = vmax.xlane.f32.xlu0 %v10_v1 }
  0x76   :  { %v12_v2 = vpop.xlane.xlu0 %11 }
  0x77   :  { %v13_v3 = vrot.slane %v12_v2, 4 }
  0x79   :  { %v14_v4 = vmax.f32 %v12_v2, %v13_v3 }
  0x7b   :  { %v15_v5 = vrot.slane %v14_v4, 2 }
  0x7d   :  { %v16_v6 = vmax.f32 %v14_v4, %v15_v5 }
  0x7f   :  { %v17_v7 = vrot.slane %v16_v6, 1 }
  0x81   :  { %v18_v8 = vmax.f32 %v16_v6, %v17_v7 }
  0x83   :  { %55 = vpush %v18_v8 }
  0xb4   :  { %s56_s8 = spop %55 }
  0xb5   :  { %v20_v9 = vstv %s56_s8 }
  0xb6   :  { %v21_v10 = vsub.f32 %v8_v0, %v20_v9 }
  0xb8   :  { %v22_v11 = vmul.f32 1.442695, %v21_v10 }
  0xba   :  { %59 = vpow2.f32 %v22_v11 }
  0xc0   :  { %v60_v12 = vpop.eup %59 }
  0xc1   :  { %v24_v13 = vsel %vm9_vm0, %v60_v12, 0.0 }
  0xc2   :  { %25 = vadd.xlane.f32.xlu0 %v24_v13 }
 0x135   :  { %v26_v14 = vpop.xlane.xlu0 %25 }
 0x136   :  { %v27_v15 = vrot.slane %v26_v14, 4 }
 0x138   :  { %v28_v16 = vadd.f32 %v27_v15, %v26_v14 }
 0x13a   :  { %v29_v17 = vrot.slane %v28_v16, 2 }
 0x13c   :  { %v30_v18 = vadd.f32 %v29_v17, %v28_v16 }
 0x13e   :  { %v31_v19 = vrot.slane %v30_v18, 1 }
 0x140   :  { %v32_v20 = vadd.f32 %v31_v19, %v30_v18 }
 0x142   :  { %57 = vpush %v32_v20 }
 0x173   :  { %s58_s0 = spop %57 }
 0x174   :  { %v34_v21 = vstv %s58_s0 }
 0x175   :  { %61 = vrcp.f32 %v34_v21  ;;  %v46_v25 = vand.u32 2147483648, %v34_v21  ;;  %v44_v27 = vand.u32 2147483647, %v34_v21  ;;  %vm40_vm2 = vweird.f32 %v34_v21 }
 0x177   :  { %v47_v29 = vor.u32 1.1754944e-38, %v46_v25  ;;  %vm45_vm4 = vcmp.eq.f32.partialorder %v44_v27, 8.507059e+37 }
 0x17b   :  { %v62_v22 = vpop.eup %61 }
 0x17c   :  { %v36_v23 = vmul.f32 %v62_v22, %v34_v21  ;;  %vm41_vm1 = vweird.f32 %v62_v22 }
 0x17d   :  { %vm42_vm3 = vmor %vm40_vm2, %vm41_vm1 }
 0x17e   :  { %v37_v24 = vsub.f32 1.0, %v36_v23 }
 0x180   :  { %v38_v26 = vmul.f32 %v62_v22, %v37_v24 }
 0x182   :  { %v39_v28 = vadd.f32 %v62_v22, %v38_v26 }
 0x184   :  { %v43_v30 = vsel %vm42_vm3, %v62_v22, %v39_v28 }
 0x185   :  { %v48_v31 = vsel %vm45_vm4, %v47_v29, %v43_v30 }
 0x186   :  { %v49_v32 = vmul.f32 %v60_v12, %v48_v31 }
 0x188   :  { %50 = vst [vmem:[%s82_s1] sm:$0x1] %v49_v32 }

</bundles_post_ra>
